<compile_context>
chip_gen: v6e
topology: v6e:2x2x1
jax: 0.10.0
libtpu: 0.0.40
codegen_flags: <defaults>
</compile_context>

<pallas_src>
import jax
import jax.numpy as jnp
from jax.experimental import pallas as pl
from jax.experimental.pallas import tpu as pltpu


# ----------------------------------------------------------------------------
# Kernel
# ----------------------------------------------------------------------------
def _make_concat_kernel(feat_sizes):
    """Kernel that concatenates len(feat_sizes) 2-D row tiles along lanes."""
    offsets = []
    off = 0
    for f in feat_sizes:
        offsets.append(off)
        off += f

    def kernel(*refs):
        in_refs = refs[:-1]
        o_ref = refs[-1]
        for r, start, size in zip(in_refs, offsets, feat_sizes):
            # Static column slice of the output tile -> plain vector stores
            # (unmasked when `start`/`size` are 128-lane aligned, masked
            # vst.msk otherwise — negligible while HBM-bound).
            o_ref[:, start:start + size] = r[...]

    return kernel


# ----------------------------------------------------------------------------
# Tiling heuristics
# ----------------------------------------------------------------------------
def _sublane_quantum(dtype):
    """Rows per vreg sublane group for this dtype (8 f32 / 16 bf16 / 32 i8)."""
    itemsize = jnp.dtype(dtype).itemsize
    return max(8, 32 // max(itemsize, 1))


def _vmem_budgets():
    """Return (tile_budget_bytes, vmem_limit_bytes) per TPU generation."""
    cap = None
    try:
        cap = pltpu.get_tpu_info().vmem_capacity_bytes
    except Exception:
        cap = None
    if cap is not None and cap >= 96 * 1024 * 1024:
        # 128 MiB VMEM chips (v5e / v6e): fat double-buffered tiles.  The
        # explicit vmem_limit_bytes is load-bearing on v5e (16 MiB default).
        return 48 * 1024 * 1024, 64 * 1024 * 1024
    # v7x (64 MiB per TC) or unknown chip: stay conservative.
    return 24 * 1024 * 1024, 32 * 1024 * 1024


def _pick_tile_rows(rows, total_feat, dtype, vmem_budget_bytes,
                    min_grid=4, min_step_bytes=2 * 1024 * 1024):
    """Budget-bound row tile with a per-step HBM-traffic floor.

    Double-buffered VMEM bytes ~= 2 * (sum(feat_i) + total_feat) * tile * isz
                                = 4 * total_feat * tile * isz.
    """
    itemsize = jnp.dtype(dtype).itemsize
    quantum = _sublane_quantum(dtype)

    def round_down(n):
        return max(quantum, (n // quantum) * quantum)

    vmem_bytes_per_row = 4 * total_feat * itemsize
    budget_rows = round_down(
        max(quantum, vmem_budget_bytes // max(vmem_bytes_per_row, 1)))

    # HBM traffic per row (read + write); floor to amortize ~0.35us/step.
    traffic_per_row = 2 * total_feat * itemsize
    floor_rows = -(-min_step_bytes // max(traffic_per_row, 1))
    floor_rows = ((floor_rows + quantum - 1) // quantum) * quantum

    tile = budget_rows
    # Megacore load balance: prefer >= min_grid steps (2x v7x TCs) as long as
    # each step still moves >= min_step_bytes of traffic.
    if rows >= min_grid * quantum:
        balanced = round_down(rows // min_grid)
        if balanced >= floor_rows:
            tile = min(tile, balanced)

    if tile >= rows:
        return rows  # single full-extent block: always layout-legal
    return min(round_down(tile), rows)


# ----------------------------------------------------------------------------
# Public wrapper (RealConCatModule.forward)
# ----------------------------------------------------------------------------
def real_concat(xs, *, tile_rows=None, small_fallback_bytes=1 * 1024 * 1024):
    """Pallas equivalent of RealConCatModule.forward: concat along last dim."""
    xs = [jnp.asarray(x) for x in xs]
    lead_shape = xs[0].shape[:-1]
    dtype = xs[0].dtype
    for x in xs:
        assert x.shape[:-1] == lead_shape, "leading dims must match"
        assert x.dtype == dtype, "dtypes must match"

    rows = 1
    for d in lead_shape:
        rows *= int(d)
    feat_sizes = [int(x.shape[-1]) for x in xs]
    total_feat = sum(feat_sizes)
    itemsize = jnp.dtype(dtype).itemsize

    # Tiny concats: launch overhead + forced HBM materialization beat any
    # kernel benefit; let XLA fuse the concat into the consumer instead.
    if 2 * rows * total_feat * itemsize < small_fallback_bytes:
        return jnp.concatenate(xs, axis=-1)

    # Flatten every input to (rows, feat_i); the concat axis stays the lane
    # (last / 128-wide) axis so output stores are lane-dense.
    xs2d = [x.reshape(rows, f) for x, f in zip(xs, feat_sizes)]

    vmem_budget, vmem_limit = _vmem_budgets()

    # --- tile selection ------------------------------------------------------
    if tile_rows is None:
        tr = _pick_tile_rows(rows, total_feat, dtype, vmem_budget)
    else:
        q = _sublane_quantum(dtype)
        vmem_bytes_per_row = 4 * total_feat * itemsize
        budget_rows = max(q, vmem_budget // max(vmem_bytes_per_row, 1))
        tr = min(int(tile_rows), rows, budget_rows)  # clamp to VMEM budget
        if tr < rows:
            tr = max(q, (tr // q) * q)

    grid = (pl.cdiv(rows, tr),)
    kernel = _make_concat_kernel(feat_sizes)

    out2d = pl.pallas_call(
        kernel,
        out_shape=jax.ShapeDtypeStruct((rows, total_feat), dtype),
        grid=grid,
        # Feature block dims are always the full per-input extent, so only the
        # row dim is tiled; Pallas masks the partial last row block.
        in_specs=[pl.BlockSpec((tr, f), lambda i: (i, 0)) for f in feat_sizes],
        out_specs=pl.BlockSpec((tr, total_feat), lambda i: (i, 0)),
        compiler_params=pltpu.CompilerParams(
            # Row tiles are independent -> shard across TCs on v7x megacore.
            dimension_semantics=("parallel",),
            vmem_limit_bytes=vmem_limit,
        ),
    )(*xs2d)

    return out2d.reshape(*lead_shape, total_feat)


# ----------------------------------------------------------------------------
# Self-test
# ----------------------------------------------------------------------------
if __name__ == "__main__":
    key = jax.random.PRNGKey(0)
    k1, k2, k3, k4, k5 = jax.random.split(key, 5)

    # 1) Typical img-text composition usage: concat image + text features
    #    along the feature (last) axis.  Forced through the Pallas path
    #    (small_fallback_bytes=0) to exercise the single-block kernel.
    batch, img_dim, txt_dim = 8, 128, 128
    img_feat = jax.random.normal(k1, (batch, img_dim), dtype=jnp.float32)
    txt_feat = jax.random.normal(k2, (batch, txt_dim), dtype=jnp.float32)
    out = jax.block_until_ready(
        real_concat([img_feat, txt_feat], small_fallback_bytes=0))
    ref = jnp.concatenate([img_feat, txt_feat], axis=-1)
    assert out.shape == (batch, img_dim + txt_dim), out.shape
    assert jnp.array_equal(out, ref), "mismatch vs reference concat (case 1)"

    # 2) Multi-tile grid path: rows not divisible by the tile, three inputs,
    #    non-128-aligned column offsets (correctness of masked stores) and a
    #    user tile_rows that exercises the budget clamp.
    a = jax.random.normal(k3, (1000, 128), dtype=jnp.float32)
    b = jax.random.normal(k4, (1000, 64), dtype=jnp.float32)
    c = jax.random.normal(k5, (1000, 32), dtype=jnp.float32)
    out2 = jax.block_until_ready(real_concat([a, b, c], tile_rows=256))
    ref2 = jnp.concatenate([a, b, c], axis=-1)
    assert jnp.array_equal(out2, ref2), "mismatch vs reference concat (case 2)"

    # 3) Higher-rank leading dims; tiny -> takes the jnp.concatenate fallback
    #    (same semantics, avoids pointless kernel launch).
    x1 = jax.random.normal(k1, (2, 4, 16), dtype=jnp.float32)
    x2 = jax.random.normal(k2, (2, 4, 48), dtype=jnp.float32)
    out3 = jax.block_until_ready(real_concat([x1, x2]))
    ref3 = jnp.concatenate([x1, x2], axis=-1)
    assert out3.shape == (2, 4, 64), out3.shape
    assert jnp.array_equal(out3, ref3), "mismatch vs reference concat (case 3)"

    # 4) Budget-driven auto tiling on a larger array (default path, grid >= 4).
    big1 = jax.random.normal(k3, (4096, 256), dtype=jnp.float32)
    big2 = jax.random.normal(k4, (4096, 128), dtype=jnp.float32)
    out4 = jax.block_until_ready(real_concat([big1, big2]))
    ref4 = jnp.concatenate([big1, big2], axis=-1)
    assert jnp.array_equal(out4, ref4), "mismatch vs reference concat (case 4)"

    print("KERNEL_OK")
</pallas_src>

<mosaic_0001>
module attributes {stable_mosaic.version = 11 : i64} {
  func.func @kernel(%arg0: i32, %arg1: memref<8x128xf32, #tpu.memory_space<vmem>>, %arg2: memref<8x128xf32, #tpu.memory_space<vmem>>, %arg3: memref<8x256xf32, #tpu.memory_space<vmem>>) attributes {dimension_semantics = [#tpu.dimension_semantics<parallel>], iteration_bounds = array<i64: 1>, scalar_prefetch = 0 : i64, scratch_operands = 0 : i64, tpu.core_type = #tpu.core_type<tc>, window_params = [{transform_indices = @transform_0, window_bounds = array<i64: 8, 128>}, {transform_indices = @transform_1, window_bounds = array<i64: 8, 128>}, {transform_indices = @transform_2, window_bounds = array<i64: 8, 256>}]} {
    %c0 = arith.constant 0 : index
    %c0_0 = arith.constant 0 : index
    %0 = vector.load %arg1[%c0, %c0_0] : memref<8x128xf32, #tpu.memory_space<vmem>>, vector<8x128xf32>
    %c0_1 = arith.constant 0 : index
    %c0_2 = arith.constant 0 : index
    %1 = vector.load %arg3[%c0_1, %c0_2] : memref<8x256xf32, #tpu.memory_space<vmem>>, vector<8x128xf32>
    tpu.vector_store %arg3[%c0_1, %c0_2], %0 {strides = array<i32>} : memref<8x256xf32, #tpu.memory_space<vmem>>, vector<8x128xf32>,
    %c0_3 = arith.constant 0 : index
    %c0_4 = arith.constant 0 : index
    %2 = vector.load %arg2[%c0_3, %c0_4] : memref<8x128xf32, #tpu.memory_space<vmem>>, vector<8x128xf32>
    %c0_5 = arith.constant 0 : index
    %c128 = arith.constant 128 : index
    %3 = vector.load %arg3[%c0_5, %c128] : memref<8x256xf32, #tpu.memory_space<vmem>>, vector<8x128xf32>
    tpu.vector_store %arg3[%c0_5, %c128], %2 {strides = array<i32>} : memref<8x256xf32, #tpu.memory_space<vmem>>, vector<8x128xf32>,
    return
  }
  func.func @transform_0(%arg0: i32) -> (i32, i32) {
    %c0_i32 = arith.constant 0 : i32
    %c0_i32_0 = arith.constant 0 : i32
    return %arg0, %c0_i32 : i32, i32
  }
  func.func @transform_1(%arg0: i32) -> (i32, i32) {
    %c0_i32 = arith.constant 0 : i32
    %c0_i32_0 = arith.constant 0 : i32
    return %arg0, %c0_i32 : i32, i32
  }
  func.func @transform_2(%arg0: i32) -> (i32, i32) {
    %c0_i32 = arith.constant 0 : i32
    %c0_i32_0 = arith.constant 0 : i32
    return %arg0, %c0_i32 : i32, i32
  }
}

</mosaic_0001>

<bundles_post_ra>
// kernel: tpu_custom_call.1
= control target key start
LH: loop header
LB: loop body
LE: loop exit
PB: predicated region body
PF: predicated region fallthrough
CT: control target
= control target key end

     0   :  { %7 = vsyncpa [#allocation3], 0  ;;  %s152_s0 = inlined_call_operand.hbm [shape: f32[8,128], index: 0, kind: input, shape index: {}]   ;;  %s153_s1 = inlined_call_operand.hbm [shape: f32[8,128], index: 1, kind: input, shape index: {}]   ;;  %s154_s2 = inlined_call_operand.hbm [shape: f32[8,256], index: 2, kind: output, shape index: {}]  }
   0x1   :  { %8 = vsyncpa [#allocation6], 0 }
   0x2   :  { %9 = vsyncpa [#allocation4], 0  ;;  %s125_s9 = smov [#allocation2]   ;;  %s126_s11 = smov [#allocation5]  }
   0x3   :  { %s16_s10 = sshll.u32 %s125_s9, 4  ;;  %s26_s12 = sshll.u32 %s126_s11, 4  ;;  %s17_s10 = int_to_ptr.vmem [resolvable:$true] %s16_s10  ;;  %s27_s12 = int_to_ptr.vmem [resolvable:$true] %s26_s12 }
   0x4   :  { %s67_s13 = scalar_lea.vmem %s17_s10, 128  ;;  %p72_p1 = scmp.lt.s32.totalorder %s17_s10, %s17_s10 }
   0x5   :  { %p68_p0 = scmp.ne.s32.totalorder %s17_s10, %s67_s13  ;;  %p73_p2 = scmp.lt.s32.totalorder %s67_s13, %s67_s13 }
   0x7   :  { %p74_p3 = por %p73_p2, %p72_p1 }
   0x9   :  { %p75_p4 = pnand %p74_p3, %p68_p0 }
   0xb   :  { %78 = shalt.err (!%p75_p4)
}
   0xc   :  { %19 = dma.hbm_to_vmem [thread:$0]  %s152_s0, 128, %s17_s10, [#allocation3]  }
   0xd   :  { %s87_s16 = scalar_lea.vmem %s27_s12, 128  ;;  %p92_p6 = scmp.lt.s32.totalorder %s27_s12, %s27_s12 }
   0xe   :  { %p88_p5 = scmp.ne.s32.totalorder %s27_s12, %s87_s16  ;;  %p93_p7 = scmp.lt.s32.totalorder %s87_s16, %s87_s16 }
  0x10   :  { %p94_p8 = por %p93_p7, %p92_p6 }
  0x12   :  { %p95_p9 = pnand %p94_p8, %p88_p5 }
  0x14   :  { %98 = shalt.err (!%p95_p9)
}
  0x15   :  { %29 = dma.hbm_to_vmem [thread:$0]  %s153_s1, 128, %s27_s12, [#allocation6]  }
  0x16   :  { %119 = dma.done.wait [#allocation3], 128  }
  0x17   :  { %120 = vsyncadd [#allocation3], 4294967168 }
  0x18   :  { %121 = dma.done.wait [#allocation6], 128  }
  0x19   :  { %122 = vsyncadd [#allocation6], 4294967168  ;;  %s127_s19 = smov [#allocation7]   ;;  %v36_v0 = vld [vmem:[#allocation2] sm:$0xff]  ;;  %v38_v1 = vld [vmem:[#allocation5] sm:$0xff] }
  0x1a   :  { %s46_s20 = sshll.u32 %s127_s19, 4  ;;  %37 = vst [vmem:[#allocation7] sm:$0xff] %v36_v0  ;;  %39 = vst [vmem:[#allocation7 + $0x8] sm:$0xff] %v38_v1  ;;  %s47_s20 = int_to_ptr.vmem [resolvable:$true] %s46_s20 }
  0x1b   :  { %s99_s0 = scalar_lea.vmem %s47_s20, 256  ;;  %p104_p11 = scmp.lt.s32.totalorder %s47_s20, %s47_s20 }
  0x1c   :  { %p100_p10 = scmp.ne.s32.totalorder %s47_s20, %s99_s0  ;;  %p105_p12 = scmp.lt.s32.totalorder %s99_s0, %s99_s0 }
  0x1e   :  { %p106_p13 = por %p105_p12, %p104_p11 }
  0x20   :  { %p107_p0 = pnand %p106_p13, %p100_p10 }
  0x22   :  { %110 = shalt.err (!%p107_p0)
}
  0x23   :  { %49 = dma.vmem_to_hbm [thread:$0]  %s47_s20, 256, %s154_s2, [#allocation4]  }
  0x24   :  { %123 = dma.done.wait [#allocation4], 256  }
  0x25   :  { %124 = vsyncadd [#allocation4], 4294967040 }
  0x26   :  { %53 = vsyncpa [#allocation3], 1 }
  0x27   :  { %54 = vsyncpa [#allocation6], 1 }
  0x28   :  { %55 = vsyncpa [#allocation4], 1 }

</bundles_post_ra>
